<compile_context>
chip_gen: v6e
topology: v6e:2x2x1
jax: 0.10.0
libtpu: 0.0.40
codegen_flags: <defaults>
</compile_context>

<pallas_src>
import jax
import jax.numpy as jnp
from jax import lax
from jax.experimental import pallas as pl
from jax.experimental.pallas import tpu as pltpu


def _round_up(x, m):
    return (x + m - 1) // m * m


def lstm_kernel(x_ref, h0_ref, c0_ref,
                wx_ref, wh_ref, bg_ref,
                whq_ref, bq_ref,
                out_ref, hT_ref, cT_ref,
                xp_ref, hh_ref, hc_ref, cc_ref):
    Tc, Bb, I = x_ref.shape
    Hp = h0_ref.shape[-1]
    cdt = wx_ref.dtype                 # matmul compute dtype (bf16 fast path / f32 exact)
    tc = pl.program_id(1)

    # ---- (re)initialise the h/c carry at the first time chunk of each batch block ----
    @pl.when(tc == 0)
    def _():
        hc_ref[...] = h0_ref[...]
        cc_ref[...] = c0_ref[...]

    # ---- hoisted per-chunk input projection: ONE MXU matmul over all Tc*Bb rows ----
    x_flat = x_ref[...].reshape(Tc * Bb, I)
    xp_ref[...] = jnp.dot(x_flat.astype(cdt), wx_ref[...],
                          preferred_element_type=jnp.float32) + bg_ref[...]

    Wh = wh_ref[...]                   # (Hp, 4*Hp) resident for the whole chunk

    def sigmoid(z):
        # logistic(z) as a single EUP tanh (no exp + divide, no inf intermediates).
        return 0.5 * (jnp.tanh(0.5 * z) + 1.0)

    def step(t, h, c):
        row = t * Bb
        if not isinstance(row, int):
            row = pl.multiple_of(row, Bb)          # Bb is a multiple of 8 -> aligned window
        gates = xp_ref[pl.ds(row, Bb), :] + jnp.dot(
            h.astype(cdt), Wh, preferred_element_type=jnp.float32)       # (Bb, 4*Hp)
        sig = sigmoid(gates[:, :3 * Hp])           # fused i|f|o; 128-lane-aligned slices
        c_tilda = jnp.tanh(gates[:, 3 * Hp:])
        i_t = sig[:, 0 * Hp:1 * Hp]
        f_t = sig[:, 1 * Hp:2 * Hp]
        o_t = sig[:, 2 * Hp:3 * Hp]
        c_new = f_t * c + i_t * c_tilda
        h_new = o_t * jnp.tanh(c_new)
        hh_ref[pl.ds(row, Bb), :] = h_new          # lane-dense (Bb, Hp) aligned store
        return h_new, c_new

    h = hc_ref[...]
    c = cc_ref[...]
    if Tc <= 16:
        # Fully unrolled serial recurrence for short chunks: max scheduler visibility.
        for t in range(Tc):
            h, c = step(t, h, c)
    else:
        h, c = lax.fori_loop(0, Tc, lambda t, hc: step(t, *hc), (h, c), unroll=8)

    hc_ref[...] = h
    cc_ref[...] = c
    hT_ref[...] = h                    # block revisited along tc; last write is what lands
    cT_ref[...] = c

    # ---- hoisted per-chunk output projection + one lane-dense batched store ----
    out_flat = jnp.dot(hh_ref[...].astype(cdt), whq_ref[...],
                       preferred_element_type=jnp.float32) + bq_ref[...]
    out_ref[...] = out_flat.reshape(Tc, Bb, -1)


def lstm_forward(X, params, H_0=None, C_0=None, *,
                 compute_dtype=jnp.bfloat16, time_chunk=None, batch_block=None):
    B, T, I = X.shape
    H = params["Whi"].shape[0]
    O = params["Whq"].shape[1]
    f32 = jnp.float32

    # ---- padded sizes: 8-sublane batch rows, 128-lane hidden / output ----
    Hp = _round_up(H, 128)
    Op = _round_up(O, 128)
    B_pad = _round_up(B, 8)

    if batch_block is None:
        batch_block = min(B_pad, 256)          # >=256 rows fills the v6e/v7x MXU M dim
    Bb = max(8, _round_up(min(int(batch_block), B_pad), 8))
    while B_pad % Bb:                          # Bb must divide padded batch
        Bb -= 8
    NB = B_pad // Bb

    if time_chunk is None:
        time_chunk = max(1, min(T, 1024 // Bb))  # keep chunk scratch to a few MiB
    Tc = max(1, min(int(time_chunk), T))
    while T % Tc:                              # Tc must divide T (no tail masking needed)
        Tc -= 1
    NT = T // Tc

    def pad2(a, rows, cols):
        return jnp.pad(a.astype(f32), ((0, rows - a.shape[0]), (0, cols - a.shape[1])))

    # Pack the 4 gates into wide weights [i|f|o|c]; each gate slice is 128-lane aligned.
    Wx = jnp.concatenate([pad2(params["Wx" + g], I, Hp) for g in "ifoc"], axis=1)
    Wh = jnp.concatenate([pad2(params["Wh" + g], Hp, Hp) for g in "ifoc"], axis=1)
    Bg = jnp.concatenate([pad2(params["b" + g], 1, Hp) for g in "ifoc"], axis=1)
    Whq = pad2(params["Whq"], Hp, Op)
    Bq = pad2(params["bq"], 1, Op)

    # MXU operands in compute_dtype; biases and gate math stay f32.
    Wx = Wx.astype(compute_dtype)
    Wh = Wh.astype(compute_dtype)
    Whq = Whq.astype(compute_dtype)

    h0 = jnp.zeros((B, H), f32) if H_0 is None else H_0.astype(f32)
    c0 = jnp.zeros((B, H), f32) if C_0 is None else C_0.astype(f32)
    h0 = pad2(h0, B_pad, Hp)
    c0 = pad2(c0, B_pad, Hp)

    # Time-major (T, B_pad, I): every per-step kernel window is a contiguous aligned block.
    x_tm = jnp.pad(jnp.transpose(X, (1, 0, 2)).astype(f32),
                   ((0, 0), (0, B_pad - B), (0, 0))).astype(compute_dtype)

    csize = jnp.dtype(compute_dtype).itemsize
    vmem_needed = (
        2 * Tc * Bb * I * csize                     # x chunk (double-buffered)
        + 2 * Tc * Bb * Op * 4                      # out chunk (double-buffered)
        + 4 * 2 * Bb * Hp * 4                       # h0/c0/hT/cT blocks
        + (I + Hp) * 4 * Hp * csize + Hp * Op * csize   # Wx, Wh, Whq
        + (4 * Hp + Op) * 4                         # biases
        + Tc * Bb * 4 * Hp * 4                      # xp scratch
        + Tc * Bb * Hp * 4                          # hh scratch
        + 2 * Bb * Hp * 4                           # h/c carry scratch
    )
    # Computed from actual buffers + headroom; never ask for all of v7x's 64 MiB.
    vmem_limit = int(min(max(vmem_needed * 3 // 2 + (4 << 20), 32 << 20), 100 << 20))

    cost = pl.CostEstimate(
        flops=2 * T * B_pad * (I * 4 * Hp + Hp * 4 * Hp + Hp * Op),
        transcendentals=5 * T * B_pad * Hp,
        bytes_accessed=(T * B_pad * I * csize + T * B_pad * Op * 4
                        + 4 * B_pad * Hp * 4
                        + (I + Hp) * 4 * Hp * csize + Hp * Op * csize
                        + (4 * Hp + Op) * 4),
    )

    out_tm, h_t, c_t = pl.pallas_call(
        lstm_kernel,
        grid=(NB, NT),
        out_shape=(
            jax.ShapeDtypeStruct((T, B_pad, Op), f32),
            jax.ShapeDtypeStruct((B_pad, Hp), f32),
            jax.ShapeDtypeStruct((B_pad, Hp), f32),
        ),
        in_specs=[
            pl.BlockSpec((Tc, Bb, I), lambda b, t: (t, b, 0)),       # X time chunk
            pl.BlockSpec((Bb, Hp), lambda b, t: (b, 0)),             # H_0
            pl.BlockSpec((Bb, Hp), lambda b, t: (b, 0)),             # C_0
            pl.BlockSpec((I, 4 * Hp), lambda b, t: (0, 0)),          # Wx packed
            pl.BlockSpec((Hp, 4 * Hp), lambda b, t: (0, 0)),         # Wh packed
            pl.BlockSpec((1, 4 * Hp), lambda b, t: (0, 0)),          # gate bias packed
            pl.BlockSpec((Hp, Op), lambda b, t: (0, 0)),             # Whq
            pl.BlockSpec((1, Op), lambda b, t: (0, 0)),              # bq
        ],
        out_specs=(
            pl.BlockSpec((Tc, Bb, Op), lambda b, t: (t, b, 0)),      # outputs chunk
            pl.BlockSpec((Bb, Hp), lambda b, t: (b, 0)),             # H_T
            pl.BlockSpec((Bb, Hp), lambda b, t: (b, 0)),             # C_T
        ),
        scratch_shapes=[
            pltpu.VMEM((Tc * Bb, 4 * Hp), f32),   # hoisted input projection (per chunk)
            pltpu.VMEM((Tc * Bb, Hp), f32),       # per-step hidden history (per chunk)
            pltpu.VMEM((Bb, Hp), f32),            # h carried across time chunks
            pltpu.VMEM((Bb, Hp), f32),            # c carried across time chunks
        ],
        compiler_params=pltpu.CompilerParams(
            dimension_semantics=("parallel", "arbitrary"),
            vmem_limit_bytes=vmem_limit),
        cost_estimate=cost,
    )(x_tm, h0, c0, Wx, Wh, Bg, Whq, Bq)

    outputs = jnp.transpose(out_tm[:, :B, :O], (1, 0, 2))    # (B, T, O)
    return outputs, h_t[:B, :H], c_t[:B, :H]


def init_params(key, input_size, hidden_size, output_size):
    # Mirrors torch.randn initialization in the module's __init__ (identical shapes).
    names_shapes = [
        ("Wxi", (input_size, hidden_size)), ("Whi", (hidden_size, hidden_size)), ("bi", (1, hidden_size)),
        ("Wxf", (input_size, hidden_size)), ("Whf", (hidden_size, hidden_size)), ("bf", (1, hidden_size)),
        ("Wxo", (input_size, hidden_size)), ("Who", (hidden_size, hidden_size)), ("bo", (1, hidden_size)),
        ("Wxc", (input_size, hidden_size)), ("Whc", (hidden_size, hidden_size)), ("bc", (1, hidden_size)),
        ("Whq", (hidden_size, output_size)), ("bq", (1, output_size)),
    ]
    keys = jax.random.split(key, len(names_shapes))
    return {name: jax.random.normal(k, shape, dtype=jnp.float32)
            for (name, shape), k in zip(names_shapes, keys)}


def lstm_reference(X, params):
    # Pure-JAX reference reproducing the PyTorch forward loop exactly (all f32).
    B, T, _ = X.shape
    Hd = params["Whi"].shape[0]
    H_t = jnp.zeros((B, Hd), jnp.float32)
    C_t = jnp.zeros((B, Hd), jnp.float32)
    outs = []
    for t in range(T):
        X_t = X[:, t, :]
        I_t = jax.nn.sigmoid(X_t @ params["Wxi"] + H_t @ params["Whi"] + params["bi"])
        F_t = jax.nn.sigmoid(X_t @ params["Wxf"] + H_t @ params["Whf"] + params["bf"])
        O_t = jax.nn.sigmoid(X_t @ params["Wxo"] + H_t @ params["Who"] + params["bo"])
        C_tilda = jnp.tanh(X_t @ params["Wxc"] + H_t @ params["Whc"] + params["bc"])
        C_t = F_t * C_t + I_t * C_tilda
        H_t = O_t * jnp.tanh(C_t)
        outs.append(H_t @ params["Whq"] + params["bq"])
    return jnp.stack(outs, axis=1), H_t, C_t


if __name__ == "__main__":
    batch, seq, input_size, hidden_size, output_size = 2, 8, 16, 32, 8

    root = jax.random.PRNGKey(0)
    k_x, k_p = jax.random.split(root)
    X = jax.random.normal(k_x, (batch, seq, input_size), dtype=jnp.float32)
    params = init_params(k_p, input_size, hidden_size, output_size)

    ref_out, ref_h, ref_c = lstm_reference(X, params)

    # --- exactness check: f32 MXU path, small time chunks (exercises the h/c carry
    #     across several grid steps) ---
    out32, h32, c32 = lstm_forward(X, params, compute_dtype=jnp.float32, time_chunk=2)
    jax.block_until_ready((out32, h32, c32))
    assert out32.shape == (batch, seq, output_size)
    assert h32.shape == (batch, hidden_size) and c32.shape == (batch, hidden_size)
    assert jnp.allclose(out32, ref_out, atol=1e-4, rtol=1e-4)
    assert jnp.allclose(h32, ref_h, atol=1e-4, rtol=1e-4)
    assert jnp.allclose(c32, ref_c, atol=1e-4, rtol=1e-4)

    # --- fast path: bf16 MXU operands (native MXU dtype).  bf16 weights perturb the
    #     recurrence, so check with a norm-relative tolerance instead of 1e-4. ---
    outbf, hbf, cbf = lstm_forward(X, params)     # default compute_dtype=bfloat16
    jax.block_until_ready((outbf, hbf, cbf))
    assert outbf.shape == (batch, seq, output_size)

    def rel_err(a, b):
        return float(jnp.sqrt(jnp.sum((a - b) ** 2)) / (jnp.sqrt(jnp.sum(b ** 2)) + 1e-6))

    assert rel_err(outbf, ref_out) < 0.1
    assert rel_err(hbf, ref_h) < 0.1
    assert rel_err(cbf, ref_c) < 0.1

    print("KERNEL_OK")
</pallas_src>

<mosaic_0001>
module attributes {stable_mosaic.version = 11 : i64} {
  func.func @lstm_kernel(%arg0: i32, %arg1: i32, %arg2: memref<2x8x16xf32, #tpu.memory_space<vmem>>, %arg3: memref<8x128xf32, #tpu.memory_space<vmem>>, %arg4: memref<8x128xf32, #tpu.memory_space<vmem>>, %arg5: memref<16x512xf32, #tpu.memory_space<vmem>>, %arg6: memref<128x512xf32, #tpu.memory_space<vmem>>, %arg7: memref<1x512xf32, #tpu.memory_space<vmem>>, %arg8: memref<128x128xf32, #tpu.memory_space<vmem>>, %arg9: memref<1x128xf32, #tpu.memory_space<vmem>>, %arg10: memref<2x8x128xf32, #tpu.memory_space<vmem>>, %arg11: memref<8x128xf32, #tpu.memory_space<vmem>>, %arg12: memref<8x128xf32, #tpu.memory_space<vmem>>, %arg13: memref<16x512xf32, #tpu.memory_space<vmem>>, %arg14: memref<16x128xf32, #tpu.memory_space<vmem>>, %arg15: memref<8x128xf32, #tpu.memory_space<vmem>>, %arg16: memref<8x128xf32, #tpu.memory_space<vmem>>) attributes {dimension_semantics = [#tpu.dimension_semantics<parallel>, #tpu.dimension_semantics<arbitrary>], iteration_bounds = array<i64: 1, 4>, scalar_prefetch = 0 : i64, scratch_operands = 4 : i64, tpu.core_type = #tpu.core_type<tc>, window_params = [{transform_indices = @transform_0, window_bounds = array<i64: 2, 8, 16>}, {transform_indices = @transform_1, window_bounds = array<i64: 8, 128>}, {transform_indices = @transform_2, window_bounds = array<i64: 8, 128>}, {pipeline_mode = #tpu.pipeline_mode<synchronous>, transform_indices = @transform_3, window_bounds = array<i64: 16, 512>}, {pipeline_mode = #tpu.pipeline_mode<synchronous>, transform_indices = @transform_4, window_bounds = array<i64: 128, 512>}, {pipeline_mode = #tpu.pipeline_mode<synchronous>, transform_indices = @transform_5, window_bounds = array<i64: 1, 512>}, {pipeline_mode = #tpu.pipeline_mode<synchronous>, transform_indices = @transform_6, window_bounds = array<i64: 128, 128>}, {pipeline_mode = #tpu.pipeline_mode<synchronous>, transform_indices = @transform_7, window_bounds = array<i64: 1, 128>}, {transform_indices = @transform_8, window_bounds = array<i64: 2, 8, 128>}, {transform_indices = @transform_9, window_bounds = array<i64: 8, 128>}, {transform_indices = @transform_10, window_bounds = array<i64: 8, 128>}]} {
    %c0_i32 = arith.constant 0 : i32
    %0 = arith.cmpi eq, %arg1, %c0_i32 : i32
    %1 = arith.extui %0 : i1 to i32
    %c0_i32_0 = arith.constant 0 : i32
    %2 = arith.cmpi ne, %1, %c0_i32_0 : i32
    scf.if %2 {
      %c0_48 = arith.constant 0 : index
      %c0_49 = arith.constant 0 : index
      %70 = vector.load %arg3[%c0_48, %c0_49] : memref<8x128xf32, #tpu.memory_space<vmem>>, vector<8x128xf32>
      %c0_50 = arith.constant 0 : index
      %c0_51 = arith.constant 0 : index
      %71 = vector.load %arg15[%c0_50, %c0_51] : memref<8x128xf32, #tpu.memory_space<vmem>>, vector<8x128xf32>
      tpu.vector_store %arg15[%c0_50, %c0_51], %70 {strides = array<i32>} : memref<8x128xf32, #tpu.memory_space<vmem>>, vector<8x128xf32>,
      %c0_52 = arith.constant 0 : index
      %c0_53 = arith.constant 0 : index
      %72 = vector.load %arg4[%c0_52, %c0_53] : memref<8x128xf32, #tpu.memory_space<vmem>>, vector<8x128xf32>
      %c0_54 = arith.constant 0 : index
      %c0_55 = arith.constant 0 : index
      %73 = vector.load %arg16[%c0_54, %c0_55] : memref<8x128xf32, #tpu.memory_space<vmem>>, vector<8x128xf32>
      tpu.vector_store %arg16[%c0_54, %c0_55], %72 {strides = array<i32>} : memref<8x128xf32, #tpu.memory_space<vmem>>, vector<8x128xf32>,
    } else {
    }
    %c0 = arith.constant 0 : index
    %c0_1 = arith.constant 0 : index
    %c0_2 = arith.constant 0 : index
    %3 = vector.load %arg2[%c0, %c0_1, %c0_2] : memref<2x8x16xf32, #tpu.memory_space<vmem>>, vector<2x8x16xf32>
    %4 = vector.shape_cast %3 : vector<2x8x16xf32> to vector<16x16xf32>
    %c0_3 = arith.constant 0 : index
    %c0_4 = arith.constant 0 : index
    %5 = vector.load %arg5[%c0_3, %c0_4] : memref<16x512xf32, #tpu.memory_space<vmem>>, vector<16x512xf32>
    %cst = arith.constant dense<0.000000e+00> : vector<16x512xf32>
    %6 = tpu.matmul %4, %5, %cst {dimension_numbers = #tpu.dot_dimension_numbers<[1], [0], [0], [1], [0, 0, 1, 1], [], []>} : vector<16x16xf32>, vector<16x512xf32>, vector<16x512xf32> -> vector<16x512xf32>
    %c0_5 = arith.constant 0 : index
    %c0_6 = arith.constant 0 : index
    %7 = vector.load %arg7[%c0_5, %c0_6] : memref<1x512xf32, #tpu.memory_space<vmem>>, vector<1x512xf32>
    %8 = vector.broadcast %7 : vector<1x512xf32> to vector<16x512xf32>
    %9 = arith.addf %6, %8 : vector<16x512xf32>
    %c0_7 = arith.constant 0 : index
    %c0_8 = arith.constant 0 : index
    %10 = vector.load %arg13[%c0_7, %c0_8] : memref<16x512xf32, #tpu.memory_space<vmem>>, vector<16x512xf32>
    tpu.vector_store %arg13[%c0_7, %c0_8], %9 {strides = array<i32>} : memref<16x512xf32, #tpu.memory_space<vmem>>, vector<16x512xf32>,
    %c0_9 = arith.constant 0 : index
    %c0_10 = arith.constant 0 : index
    %11 = vector.load %arg6[%c0_9, %c0_10] : memref<128x512xf32, #tpu.memory_space<vmem>>, vector<128x512xf32>
    %c0_11 = arith.constant 0 : index
    %c0_12 = arith.constant 0 : index
    %12 = vector.load %arg15[%c0_11, %c0_12] : memref<8x128xf32, #tpu.memory_space<vmem>>, vector<8x128xf32>
    %c0_13 = arith.constant 0 : index
    %c0_14 = arith.constant 0 : index
    %13 = vector.load %arg16[%c0_13, %c0_14] : memref<8x128xf32, #tpu.memory_space<vmem>>, vector<8x128xf32>
    %c0_15 = arith.constant 0 : index
    %c0_16 = arith.constant 0 : index
    %14 = vector.load %arg13[%c0_15, %c0_16] : memref<16x512xf32, #tpu.memory_space<vmem>>, vector<8x512xf32>
    %cst_17 = arith.constant dense<0.000000e+00> : vector<8x512xf32>
    %15 = tpu.matmul %12, %11, %cst_17 {dimension_numbers = #tpu.dot_dimension_numbers<[1], [0], [0], [1], [0, 0, 1, 1], [], []>} : vector<8x128xf32>, vector<128x512xf32>, vector<8x512xf32> -> vector<8x512xf32>
    %16 = arith.addf %14, %15 : vector<8x512xf32>
    %17 = vector.extract_strided_slice %16 {offsets = [0, 0], sizes = [8, 384], strides = [1, 1]} : vector<8x512xf32> to vector<8x384xf32>
    %cst_18 = arith.constant 5.000000e-01 : f32
    %18 = vector.broadcast %cst_18 : f32 to vector<8x384xf32>
    %19 = arith.mulf %18, %17 : vector<8x384xf32>
    %20 = math.tanh %19 : vector<8x384xf32>
    %cst_19 = arith.constant 1.000000e+00 : f32
    %21 = vector.broadcast %cst_19 : f32 to vector<8x384xf32>
    %22 = arith.addf %20, %21 : vector<8x384xf32>
    %cst_20 = arith.constant 5.000000e-01 : f32
    %23 = vector.broadcast %cst_20 : f32 to vector<8x384xf32>
    %24 = arith.mulf %23, %22 : vector<8x384xf32>
    %25 = vector.extract_strided_slice %16 {offsets = [0, 384], sizes = [8, 128], strides = [1, 1]} : vector<8x512xf32> to vector<8x128xf32>
    %26 = math.tanh %25 : vector<8x128xf32>
    %27 = vector.extract_strided_slice %24 {offsets = [0, 0], sizes = [8, 128], strides = [1, 1]} : vector<8x384xf32> to vector<8x128xf32>
    %28 = vector.extract_strided_slice %24 {offsets = [0, 128], sizes = [8, 128], strides = [1, 1]} : vector<8x384xf32> to vector<8x128xf32>
    %29 = vector.extract_strided_slice %24 {offsets = [0, 256], sizes = [8, 128], strides = [1, 1]} : vector<8x384xf32> to vector<8x128xf32>
    %30 = arith.mulf %28, %13 : vector<8x128xf32>
    %31 = arith.mulf %27, %26 : vector<8x128xf32>
    %32 = arith.addf %30, %31 : vector<8x128xf32>
    %33 = math.tanh %32 : vector<8x128xf32>
    %34 = arith.mulf %29, %33 : vector<8x128xf32>
    %c0_21 = arith.constant 0 : index
    %c0_22 = arith.constant 0 : index
    %35 = vector.load %arg14[%c0_21, %c0_22] : memref<16x128xf32, #tpu.memory_space<vmem>>, vector<8x128xf32>
    tpu.vector_store %arg14[%c0_21, %c0_22], %34 {strides = array<i32>} : memref<16x128xf32, #tpu.memory_space<vmem>>, vector<8x128xf32>,
    %c8 = arith.constant 8 : index
    %c0_23 = arith.constant 0 : index
    %36 = vector.load %arg13[%c8, %c0_23] : memref<16x512xf32, #tpu.memory_space<vmem>>, vector<8x512xf32>
    %cst_24 = arith.constant dense<0.000000e+00> : vector<8x512xf32>
    %37 = tpu.matmul %34, %11, %cst_24 {dimension_numbers = #tpu.dot_dimension_numbers<[1], [0], [0], [1], [0, 0, 1, 1], [], []>} : vector<8x128xf32>, vector<128x512xf32>, vector<8x512xf32> -> vector<8x512xf32>
    %38 = arith.addf %36, %37 : vector<8x512xf32>
    %39 = vector.extract_strided_slice %38 {offsets = [0, 0], sizes = [8, 384], strides = [1, 1]} : vector<8x512xf32> to vector<8x384xf32>
    %cst_25 = arith.constant 5.000000e-01 : f32
    %40 = vector.broadcast %cst_25 : f32 to vector<8x384xf32>
    %41 = arith.mulf %40, %39 : vector<8x384xf32>
    %42 = math.tanh %41 : vector<8x384xf32>
    %cst_26 = arith.constant 1.000000e+00 : f32
    %43 = vector.broadcast %cst_26 : f32 to vector<8x384xf32>
    %44 = arith.addf %42, %43 : vector<8x384xf32>
    %cst_27 = arith.constant 5.000000e-01 : f32
    %45 = vector.broadcast %cst_27 : f32 to vector<8x384xf32>
    %46 = arith.mulf %45, %44 : vector<8x384xf32>
    %47 = vector.extract_strided_slice %38 {offsets = [0, 384], sizes = [8, 128], strides = [1, 1]} : vector<8x512xf32> to vector<8x128xf32>
    %48 = math.tanh %47 : vector<8x128xf32>
    %49 = vector.extract_strided_slice %46 {offsets = [0, 0], sizes = [8, 128], strides = [1, 1]} : vector<8x384xf32> to vector<8x128xf32>
    %50 = vector.extract_strided_slice %46 {offsets = [0, 128], sizes = [8, 128], strides = [1, 1]} : vector<8x384xf32> to vector<8x128xf32>
    %51 = vector.extract_strided_slice %46 {offsets = [0, 256], sizes = [8, 128], strides = [1, 1]} : vector<8x384xf32> to vector<8x128xf32>
    %52 = arith.mulf %50, %32 : vector<8x128xf32>
    %53 = arith.mulf %49, %48 : vector<8x128xf32>
    %54 = arith.addf %52, %53 : vector<8x128xf32>
    %55 = math.tanh %54 : vector<8x128xf32>
    %56 = arith.mulf %51, %55 : vector<8x128xf32>
    %c8_28 = arith.constant 8 : index
    %c0_29 = arith.constant 0 : index
    %57 = vector.load %arg14[%c8_28, %c0_29] : memref<16x128xf32, #tpu.memory_space<vmem>>, vector<8x128xf32>
    tpu.vector_store %arg14[%c8_28, %c0_29], %56 {strides = array<i32>} : memref<16x128xf32, #tpu.memory_space<vmem>>, vector<8x128xf32>,
    %c0_30 = arith.constant 0 : index
    %c0_31 = arith.constant 0 : index
    %58 = vector.load %arg15[%c0_30, %c0_31] : memref<8x128xf32, #tpu.memory_space<vmem>>, vector<8x128xf32>
    tpu.vector_store %arg15[%c0_30, %c0_31], %56 {strides = array<i32>} : memref<8x128xf32, #tpu.memory_space<vmem>>, vector<8x128xf32>,
    %c0_32 = arith.constant 0 : index
    %c0_33 = arith.constant 0 : index
    %59 = vector.load %arg16[%c0_32, %c0_33] : memref<8x128xf32, #tpu.memory_space<vmem>>, vector<8x128xf32>
    tpu.vector_store %arg16[%c0_32, %c0_33], %54 {strides = array<i32>} : memref<8x128xf32, #tpu.memory_space<vmem>>, vector<8x128xf32>,
    %c0_34 = arith.constant 0 : index
    %c0_35 = arith.constant 0 : index
    %60 = vector.load %arg11[%c0_34, %c0_35] : memref<8x128xf32, #tpu.memory_space<vmem>>, vector<8x128xf32>
    tpu.vector_store %arg11[%c0_34, %c0_35], %56 {strides = array<i32>} : memref<8x128xf32, #tpu.memory_space<vmem>>, vector<8x128xf32>,
    %c0_36 = arith.constant 0 : index
    %c0_37 = arith.constant 0 : index
    %61 = vector.load %arg12[%c0_36, %c0_37] : memref<8x128xf32, #tpu.memory_space<vmem>>, vector<8x128xf32>
    tpu.vector_store %arg12[%c0_36, %c0_37], %54 {strides = array<i32>} : memref<8x128xf32, #tpu.memory_space<vmem>>, vector<8x128xf32>,
    %c0_38 = arith.constant 0 : index
    %c0_39 = arith.constant 0 : index
    %62 = vector.load %arg14[%c0_38, %c0_39] : memref<16x128xf32, #tpu.memory_space<vmem>>, vector<16x128xf32>
    %c0_40 = arith.constant 0 : index
    %c0_41 = arith.constant 0 : index
    %63 = vector.load %arg8[%c0_40, %c0_41] : memref<128x128xf32, #tpu.memory_space<vmem>>, vector<128x128xf32>
    %cst_42 = arith.constant dense<0.000000e+00> : vector<16x128xf32>
    %64 = tpu.matmul %62, %63, %cst_42 {dimension_numbers = #tpu.dot_dimension_numbers<[1], [0], [0], [1], [0, 0, 1, 1], [], []>} : vector<16x128xf32>, vector<128x128xf32>, vector<16x128xf32> -> vector<16x128xf32>
    %c0_43 = arith.constant 0 : index
    %c0_44 = arith.constant 0 : index
    %65 = vector.load %arg9[%c0_43, %c0_44] : memref<1x128xf32, #tpu.memory_space<vmem>>, vector<1x128xf32>
    %66 = vector.broadcast %65 : vector<1x128xf32> to vector<16x128xf32>
    %67 = arith.addf %64, %66 : vector<16x128xf32>
    %68 = vector.shape_cast %67 : vector<16x128xf32> to vector<2x8x128xf32>
    %c0_45 = arith.constant 0 : index
    %c0_46 = arith.constant 0 : index
    %c0_47 = arith.constant 0 : index
    %69 = vector.load %arg10[%c0_45, %c0_46, %c0_47] : memref<2x8x128xf32, #tpu.memory_space<vmem>>, vector<2x8x128xf32>
    tpu.vector_store %arg10[%c0_45, %c0_46, %c0_47], %68 {strides = array<i32>} : memref<2x8x128xf32, #tpu.memory_space<vmem>>, vector<2x8x128xf32>,
    return
  }
  func.func @transform_0(%arg0: i32, %arg1: i32) -> (i32, i32, i32) {
    %c0_i32 = arith.constant 0 : i32
    %c0_i32_0 = arith.constant 0 : i32
    return %arg1, %arg0, %c0_i32 : i32, i32, i32
  }
  func.func @transform_1(%arg0: i32, %arg1: i32) -> (i32, i32) {
    %c0_i32 = arith.constant 0 : i32
    %c0_i32_0 = arith.constant 0 : i32
    return %arg0, %c0_i32 : i32, i32
  }
  func.func @transform_2(%arg0: i32, %arg1: i32) -> (i32, i32) {
    %c0_i32 = arith.constant 0 : i32
    %c0_i32_0 = arith.constant 0 : i32
    return %arg0, %c0_i32 : i32, i32
  }
  func.func @transform_3(%arg0: i32, %arg1: i32) -> (i32, i32) {
    %c0_i32 = arith.constant 0 : i32
    %c0_i32_0 = arith.constant 0 : i32
    %c0_i32_1 = arith.constant 0 : i32
    return %c0_i32, %c0_i32_0 : i32, i32
  }
  func.func @transform_4(%arg0: i32, %arg1: i32) -> (i32, i32) {
    %c0_i32 = arith.constant 0 : i32
    %c0_i32_0 = arith.constant 0 : i32
    %c0_i32_1 = arith.constant 0 : i32
    return %c0_i32, %c0_i32_0 : i32, i32
  }
  func.func @transform_5(%arg0: i32, %arg1: i32) -> (i32, i32) {
    %c0_i32 = arith.constant 0 : i32
    %c0_i32_0 = arith.constant 0 : i32
    %c0_i32_1 = arith.constant 0 : i32
    return %c0_i32, %c0_i32_0 : i32, i32
  }
  func.func @transform_6(%arg0: i32, %arg1: i32) -> (i32, i32) {
    %c0_i32 = arith.constant 0 : i32
    %c0_i32_0 = arith.constant 0 : i32
    %c0_i32_1 = arith.constant 0 : i32
    return %c0_i32, %c0_i32_0 : i32, i32
  }
  func.func @transform_7(%arg0: i32, %arg1: i32) -> (i32, i32) {
    %c0_i32 = arith.constant 0 : i32
    %c0_i32_0 = arith.constant 0 : i32
    %c0_i32_1 = arith.constant 0 : i32
    return %c0_i32, %c0_i32_0 : i32, i32
  }
  func.func @transform_8(%arg0: i32, %arg1: i32) -> (i32, i32, i32) {
    %c0_i32 = arith.constant 0 : i32
    %c0_i32_0 = arith.constant 0 : i32
    return %arg1, %arg0, %c0_i32 : i32, i32, i32
  }
  func.func @transform_9(%arg0: i32, %arg1: i32) -> (i32, i32) {
    %c0_i32 = arith.constant 0 : i32
    %c0_i32_0 = arith.constant 0 : i32
    return %arg0, %c0_i32 : i32, i32
  }
  func.func @transform_10(%arg0: i32, %arg1: i32) -> (i32, i32) {
    %c0_i32 = arith.constant 0 : i32
    %c0_i32_0 = arith.constant 0 : i32
    return %arg0, %c0_i32 : i32, i32
  }
}

</mosaic_0001>

<bundles_post_ra>
// kernel: tpu_custom_call.1
= control target key start
LH: loop header
LB: loop body
LE: loop exit
PB: predicated region body
PF: predicated region fallthrough
CT: control target
= control target key end

     0   :  { %s2586_s0 = inlined_call_operand.hbm [shape: f32[8,8,16], index: 0, kind: input, shape index: {}]   ;;  %s2587_s1 = inlined_call_operand.hbm [shape: f32[8,128], index: 1, kind: input, shape index: {}]   ;;  %s2588_s2 = inlined_call_operand.hbm [shape: f32[8,128], index: 2, kind: input, shape index: {}]   ;;  %s2589_s3 = inlined_call_operand.hbm [shape: f32[16,512], index: 3, kind: input, shape index: {}]   ;;  %s2590_s4 = inlined_call_operand.hbm [shape: f32[128,512], index: 4, kind: input, shape index: {}]   ;;  %s2591_s5 = inlined_call_operand.vmem [shape: f32[1,512], index: 5, kind: input, shape index: {}]   ;;  %s2592_s6 = inlined_call_operand.hbm [shape: f32[128,128], index: 6, kind: input, shape index: {}]   ;;  %s2593_s7 = inlined_call_operand.vmem [shape: f32[1,128], index: 7, kind: input, shape index: {}]   ;;  %s2594_s8 = inlined_call_operand.hbm [shape: f32[8,8,128], index: 8, kind: output, shape index: {0}]   ;;  %s2595_s9 = inlined_call_operand.hbm [shape: f32[8,128], index: 9, kind: output, shape index: {1}]   ;;  %s2596_s10 = inlined_call_operand.hbm [shape: f32[8,128], index: 10, kind: output, shape index: {2}]  }
   0x1   :  { %2607 = sst [smem:[#allocation31_spill]] %s2587_s1 }
   0x2   :  { %2608 = sst [smem:[#allocation32_spill]] %s2588_s2 }
   0x3   :  { %2609 = sst [smem:[#allocation33_spill]] %s2589_s3 }
   0x4   :  { %2610 = sst [smem:[#allocation34_spill]] %s2590_s4 }
   0x5   :  { %2611 = sst [smem:[#allocation35_spill]] %s2592_s6 }
   0x6   :  { %16 = vsyncpa [#allocation7], 0 }
   0x7   :  { %18 = vsyncpa [#allocation7 + $0x1], 0 }
   0x8   :  { %19 = vsyncpa [#allocation10], 0 }
   0x9   :  { %20 = vsyncpa [#allocation13], 0 }
   0xa   :  { %21 = vsyncpa [#allocation16], 0 }
   0xb   :  { %22 = vsyncpa [#allocation8], 0 }
   0xc   :  { %24 = vsyncpa [#allocation8 + $0x1], 0 }
   0xd   :  { %25 = vsyncpa [#allocation19], 0  ;;  %s2027_s13 = smov 0   ;;  %s2029_s14 = smov 0  }
   0xe   :  { %s2031_s15 = smov 0   ;;  %s2033_s16 = smov 0  }
   0xf   :  { %s2035_s17 = smov 0   ;;  %s2037_s18 = smov 0  }
  0x10 LB: > { %2612 = sst [smem:[#allocation27_spill]] %s1950_s17  ;;  %s2600_s19 = sadd.s32 4294967295, %s1954_s18   ;;  %s1954_s18 = sphi %s2037_s18, %s31_s18   ;;  %s1950_s17 = sphi %s2035_s17, %s2642_s17   ;;  %s1946_s16 = sphi %s2033_s16, %s2641_s16   ;;  %s1942_s15 = sphi %s2031_s15, %s2645_s15   ;;  %s1938_s14 = sphi %s2029_s14, %s2644_s14   ;;  %s1934_s13 = sphi %s2027_s13, %s2643_s13  }
  0x11   : > { %p1410_p0 = scmp.ge.s32.totalorder %s1954_s18, 1  ;;  %p2061_p1 = scmp.eq.s32.totalorder %s2600_s19, 0 }
  0x12   : > { %p313_p2 = scmp.lt.s32.totalorder %s1954_s18, 5  ;;  %s1956_s22 = smov [#allocation9]  }
  0x13   : > { %s2613_s20 = scalar_select %p2061_p1, 1, 0 }
  0x14   : > { %p2066_p3 = pnand %p1410_p0, %p313_p2  ;;  %s328_s23 = sshll.u32 %s1956_s22, 4  ;;  %s329_s23 = int_to_ptr.vmem [resolvable:$true] %s328_s23 }
  0x15   : > { %s1957_s24 = smov [#allocation12]   ;;  %s1958_s27 = smov [#allocation11]  }
  0x16   : > { %s2614_s21 = scalar_select %p2066_p3, 1, 0 }
  0x17   : > { %p1530_p4 = pneg %p2066_p3  ;;  %s351_s25 = sshll.u32 %s1957_s24, 4  ;;  %s352_s25 = int_to_ptr.vmem [resolvable:$true] %s351_s25 }
  0x18   : > { %s341_s28 = sshll.u32 %s1958_s27, 4  ;;  %s1663_s30 = scalar_lea.vmem %s329_s23, 128  ;;  %s342_s28 = int_to_ptr.vmem [resolvable:$true] %s341_s28 }
  0x19   : > { %p2074_p5 = pnand %p1530_p4, %p2061_p1  ;;  %p1664_p7 = scmp.ne.s32.totalorder %s329_s23, %s1663_s30 }
  0x1a   : > { %p1671_p10 = scmp.lt.s32.totalorder %s329_s23, %s329_s23  ;;  %p1672_p11 = scmp.lt.s32.totalorder %s1663_s30, %s1663_s30 }
  0x1b   : > { %p2080_p6 = pneg %p2074_p5 }
  0x1c   : > { %p1673_p12 = por %p1672_p11, %p1671_p10 }
  0x1d   : > { %p1666_p8 = pnand %p1664_p7, %p2080_p6 }
  0x1f   : > { %p1667_p9 = pneg %p1666_p8 }
  0x21   : > { %p1674_p13 = pnand %p1673_p12, %p1667_p9 }
  0x23   : > { %1677 = shalt.err (!%p1674_p13)
}
  0x24   : > { %s2617_s1 = sld [smem:[#allocation31_spill]]  ;;  %s1689_s22 = scalar_lea.vmem %s352_s25, 1024 }
  0x25   : > { %p1690_p0 = scmp.ne.s32.totalorder %s352_s25, %s1689_s22  ;;  %p1697_p3 = scmp.lt.s32.totalorder %s352_s25, %s352_s25 }
  0x26   : > { %p1698_p7 = scmp.lt.s32.totalorder %s1689_s22, %s1689_s22 }
  0x27   : > { %p1692_p2 = pnand %p1690_p0, %p2080_p6 }
  0x28   : > { %p1699_p8 = por %p1698_p7, %p1697_p3 }
  0x29   : > { %p1693_p4 = pneg %p1692_p2 }
  0x2a   : > { %1533 = dma.hbm_to_vmem [thread:$0]  (!%p2074_p5), %s2617_s1, 128, %s329_s23, [#allocation10]  }
  0x2b   : > { %p1700_p1 = pnand %p1699_p8, %p1693_p4 }
  0x2d   : > { %1703 = shalt.err (!%p1700_p1)
}
  0x2e   : > { %s2601_s24 = smov 512   ;;  %s1960_s27 = smov 32  }
  0x2f   : > { %s2618_s3 = sld [smem:[#allocation33_spill]]  ;;  %s1715_s11 = scalar_lea.vmem %s342_s28, 128 }
  0x30   : > { %p1716_p9 = scmp.ne.s32.totalorder %s342_s28, %s1715_s11  ;;  %p1723_p11 = scmp.lt.s32.totalorder %s342_s28, %s342_s28 }
  0x31   : > { %p1724_p1 = scmp.lt.s32.totalorder %s1715_s11, %s1715_s11 }
  0x32   : > { %p1718_p10 = pnand %p1716_p9, %p2080_p6 }
  0x33   : > { %p1725_p12 = por %p1724_p1, %p1723_p11 }
  0x34   : > { %p1719_p3 = pneg %p1718_p10 }
  0x35   : > { %1539 = dma.hbm_to_vmem [thread:$0]  (!%p2074_p5), %s2618_s3, 1024, %s352_s25, [#allocation13], %s2601_s24, %s2601_s24, %s1960_s27  }
  0x36   : > { %p1726_p13 = pnand %p1725_p12, %p1719_p3 }
  0x38   : > { %1729 = shalt.err (!%p1726_p13)
}
  0x39   : > { %s2619_s2 = sld [smem:[#allocation32_spill]]  ;;  %s1961_s30 = smov [#allocation14]  }
  0x3a   : > { %s364_s25 = sshll.u32 %s1961_s30, 4  ;;  %s1962_s23 = smov [#allocation15]   ;;  %s365_s25 = int_to_ptr.vmem [resolvable:$true] %s364_s25 }
  0x3b   : > { %s380_s19 = sshll.u32 %s1962_s23, 4  ;;  %s1741_s24 = scalar_lea.vmem %s365_s25, 8192  ;;  %s381_s19 = int_to_ptr.vmem [resolvable:$true] %s380_s19 }
  0x3c   : > { %p1742_p0 = scmp.ne.s32.totalorder %s365_s25, %s1741_s24  ;;  %p1749_p7 = scmp.lt.s32.totalorder %s365_s25, %s365_s25 }
  0x3d   : > { %p1750_p8 = scmp.lt.s32.totalorder %s1741_s24, %s1741_s24 }
  0x3e   : > { %p1744_p2 = pnand %p1742_p0, %p2080_p6 }
  0x3f   : > { %1536 = dma.hbm_to_vmem [thread:$0]  (!%p2074_p5), %s2619_s2, 128, %s342_s28, [#allocation10]  }
  0x40   : > { %p1745_p4 = pneg %p1744_p2  ;;  %p1751_p9 = por %p1750_p8, %p1749_p7 }
  0x42   : > { %p1752_p10 = pnand %p1751_p9, %p1745_p4 }
  0x44   : > { %1755 = shalt.err (!%p1752_p10)
}
  0x45   : > { %s2620_s11 = smov 512   ;;  %s2621_s4 = sld [smem:[#allocation34_spill]] }
  0x46   : > { %s1767_s22 = scalar_lea.vmem %s381_s19, 2048  ;;  %p1775_p12 = scmp.lt.s32.totalorder %s381_s19, %s381_s19 }
  0x47   : > { %p1768_p3 = scmp.ne.s32.totalorder %s381_s19, %s1767_s22  ;;  %p1776_p13 = scmp.lt.s32.totalorder %s1767_s22, %s1767_s22 }
  0x49   : > { %p1770_p11 = pnand %p1768_p3, %p2080_p6  ;;  %p1777_p0 = por %p1776_p13, %p1775_p12 }
  0x4b   : > { %1542 = dma.hbm_to_vmem [thread:$0]  (!%p2074_p5), %s2621_s4, 8192, %s365_s25, [#allocation13], %s2620_s11, %s2620_s11, %s1960_s27  }
  0x4c   : > { %p1771_p1 = pneg %p1770_p11 }
  0x4e   : > { %p1778_p2 = pnand %p1777_p0, %p1771_p1 }
  0x50   : > { %1781 = shalt.err (!%p1778_p2)
}
  0x51   : > { %s2602_s24 = smov 128   ;;  %s2603_s29 = smov 8  }
  0x52   : > { %s2622_s6 = sld [smem:[#allocation35_spill]]  ;;  %s1409_s25 = sadd.s32 4294967294, %s1954_s18  }
  0x53   : > { %s40_s23 = sadd.s32 1, %s1950_s17  ;;  %s52_s11 = sadd.s32 1, %s1942_s15 }
  0x54   : > { %p41_p6 = scmp.ge.s32.totalorder %s40_s23, 4  ;;  %p59_p4 = scmp.ne.s32.totalorder %s1942_s15, %s1938_s14 }
  0x55   : > { %p60_p7 = scmp.eq.s32.totalorder %s1954_s18, 0  ;;  %p65_p8 = scmp.ne.s32.totalorder %s1938_s14, %s1934_s13 }
  0x56   : > { %s2647_s23 = smov (%p41_p6, %s40_s23), 0  ;;  %p2625_p10 = scmp.ne.s32.totalorder %s2613_s20, 0 }
  0x57   : > { %2623 = sst [smem:[#allocation28_spill]] %s2647_s23  ;;  %p2138_p9 = por %p60_p7, %p59_p4 }
  0x58   : > { %1545 = dma.hbm_to_vmem [thread:$0]  (!%p2074_p5), %s2622_s6, 2048, %s381_s19, [#allocation16], %s2602_s24, %s2602_s24, %s2603_s29  }
  0x59   : > { %p2144_p5 = por %p2625_p10, %p65_p8  ;;  %s47_s28 = ssub.s32 %s1950_s17, %s2647_s23 }
  0x5a   : > { %s2627_s12 = sadd.s32 4294967295, %s1954_s18   ;;  %p50_p11 = scmp.eq.s32.totalorder %s47_s28, 0 }
  0x5b   : > { %p2152_p3 = scmp.eq.s32.totalorder %s2627_s12, 3  ;;  %p254_p1 = scmp.eq.s32.totalorder %s1409_s25, 3 }
  0x5c   : > { %p1559_p13 = scmp.lt.s32.totalorder %s1954_s18, 4  ;;  %s397_s29 = sand.u32 1, %s1942_s15  }
  0x5d   : > { %p2158_p12 = por %p2152_p3, %p59_p4  ;;  %p2166_p0 = por %p254_p1, %p65_p8 }
  0x5e   : > { %s2164_s30 = scalar_select %p50_p11, %s1942_s15, %s52_s11  }
  0x5f   : > { %s2631_s24 = scalar_select %p2166_p0, 1, 0 }
  0x60   : > { %2630 = sst [smem:[#allocation29_spill]] %s2164_s30  ;;  %s1417_s12 = sshll.u32 %s397_s29, 4 }
  0x61   : > { %s1443_s1 = sshll.u32 %s1950_s17, 8  ;;  %s401_s25 = scalar_lea.vmem [#allocation6], %s1417_s12 }
  0x62   : > { %s408_s28 = scalar_lea.hbm %s2586_s0, %s1443_s1  ;;  %s409_s4 = sshll.u32 %s401_s25, 4  ;;  %s410_s4 = int_to_ptr.vmem [resolvable:$true] %s409_s4 }
  0x63   : > { %p2177_p2 = pnand %p1559_p13, %p2138_p9  ;;  %s398_s11 = scalar_lea.sflag [#allocation7], %s397_s29 }
  0x64   : > { %s1795_s23 = scalar_lea.vmem %s410_s4, 256  ;;  %s1965_s17 = smov [#allocation6]  }
  0x65   : > { %p1784_p6 = pneg %p2177_p2  ;;  %p1796_p4 = scmp.ne.s32.totalorder %s410_s4, %s1795_s23 }
  0x66   : > { %s1800_s30 = sshll.u32 %s1965_s17, 4  ;;  %s1801_s30 = int_to_ptr.vmem [resolvable:$false] %s1800_s30 }
  0x67   : > { %p1798_p7 = pnand %p1796_p4, %p1784_p6  ;;  %s1802_s1 = scalar_lea.vmem %s1801_s30, 512 }
  0x68   : > { %p1803_p10 = scmp.lt.s32.totalorder %s410_s4, %s1801_s30  ;;  %p1804_p11 = scmp.lt.s32.totalorder %s1802_s1, %s1795_s23 }
  0x69   : > { %p1799_p8 = pneg %p1798_p7 }
  0x6a   : > { %p1805_p1 = por %p1804_p11, %p1803_p10 }
  0x6c   : > { %p1806_p0 = pnand %p1805_p1, %p1799_p8 }
  0x6e   : > { %1809 = shalt.err (!%p1806_p0)
}
  0x6f   : > { %s2633_s2 = smov 8   ;;  %s2634_s3 = smov 128  }
  0x70   : > { %1549 = dma.hbm_to_vmem [thread:$0]  (!%p2177_p2), %s408_s28, 256, %s410_s4, %s398_s11, %s2634_s3, %s2634_s3, %s2633_s2  }
  0x71   : > { %p2635_p9 = scmp.ne.s32.totalorder %s2614_s21, 0 }
  0x73   : > { %421 = sbr.rel (%p2635_p9) target bundleno = 867 (0x363), region = 52 }
  0x78   : > { %s2191_s29 = sand.u32 1, %s1938_s14  }
  0x79   : > { %s1421_s17 = sshll.u32 %s2191_s29, 4  ;;  %s424_s23 = scalar_lea.sflag [#allocation7], %s2191_s29 }
  0x7a   : > { %s2195_s26 = scalar_lea.vmem [#allocation6], %s1421_s17 }
  0x7b   : > { %1909 = dma.done.wait (%p2144_p5), %s424_s23, 256  }
  0x7c   : > { %1911 = vsyncadd (%p2144_p5), %s424_s23, 4294967040  ;;  %p2636_p13 = scmp.ne.s32.totalorder %s2613_s20, 0 }
  0x7e   : > { %1913 = dma.done.wait (%p2636_p13), [#allocation10], 256  }
  0x7f   : > { %1915 = vsyncadd (%p2636_p13), [#allocation10], 4294967040 }
  0x80   : > { %1917 = dma.done.wait (%p2636_p13), [#allocation13], 9216  }
  0x81   : > { %1919 = vsyncadd (%p2636_p13), [#allocation13], 4294958080 }
  0x82   : > { %1921 = dma.done.wait (%p2636_p13), [#allocation16], 2048  }
  0x83   : > { %1923 = vsyncadd (%p2636_p13), [#allocation16], 4294965248  ;;  %s2213_s4 = scalar_lea.vmem [#allocation17], %s1421_s17  ;;  %p1428_p5 = scmp.ne.s32.totalorder %s1946_s16, 0 }
  0x85   : > { %489 = sbr.rel (%p1428_p5) target bundleno = 140 (0x8c), region = 80 }
  0x8a   : > { %v490_v0 = vld [vmem:[#allocation9] sm:$0xff]  ;;  %v492_v1 = vld [vmem:[#allocation11] sm:$0xff] }
  0x8b   : > { %491 = vst [vmem:[#allocation4] sm:$0xff] %v490_v0  ;;  %493 = vst [vmem:[#allocation5] sm:$0xff] %v492_v1 }
  0x8c PF: > { %v501_v2 = vld [vmem:[#allocation12 + $0x28] sm:$0xff]  ;;  %v500_v4 = vld [vmem:[#allocation12 + $0x20] sm:$0xff]  ;;  %vm526_vm0 = vcmask 130048   ;;  %v503_v11 = vld [vmem:[#allocation12 + $0x38] sm:$0xff]  ;;  %v1966_v13 = vmov 0.0   ;;  %s1967_s21 = smov [#allocation18]  }
  0x8d   : > { %v2216_v3 = vld [vmem:[#allocation14 + $0x1e8] sm:$0xff]  ;;  %561 = vmatprep.subr.mxu1 %v501_v2  ;;  %v2219_v5 = vld [vmem:[#allocation14 + $0x1e0] sm:$0xff]  ;;  %597 = vmatprep.mubr.f32.mxu1 %v1966_v13  ;;  %v502_v14 = vld [vmem:[#allocation12 + $0x30] sm:$0xff]  ;;  %s1236_s19 = sshll.u32 %s1967_s21, 4  ;;  %s1237_s19 = int_to_ptr.vmem [resolvable:$true] %s1236_s19 }
  0x8e   : > { %765 = vmatprep.subr.mxu0 %v2216_v3  ;;  %v497_v6 = vld [vmem:[#allocation12 + $0x8] sm:$0xff]  ;;  %562 = vmatpush1.msra.mxu1 %v500_v4  ;;  %v496_v8 = vld [vmem:[#allocation12] sm:$0xff]  ;;  %v499_v19 = vld [vmem:[#allocation12 + $0x18] sm:$0xff]  ;;  %s1810_s30 = scalar_lea.vmem %s1237_s19, 128  ;;  %p1817_p4 = scmp.lt.s32.totalorder %s1237_s19, %s1237_s19 }
  0x8f   : > { %v2221_v7 = vld [vmem:[#allocation14 + $0x1c8] sm:$0xff]  ;;  %766 = vmatpush1.msra.mxu0 %v2219_v5  ;;  %v2224_v9 = vld [vmem:[#allocation14 + $0x1c0] sm:$0xff]  ;;  %563 = vmatprep.subr.mxu1 %v497_v6  ;;  %v498_v21 = vld [vmem:[#allocation12 + $0x10] sm:$0xff]  ;;  %p1811_p0 = scmp.ne.s32.totalorder %s1237_s19, %s1810_s30  ;;  %p1818_p7 = scmp.lt.s32.totalorder %s1810_s30, %s1810_s30 }
  0x90   : > { %v494_v10 = vld [vmem:[%s2195_s26] sm:$0xff]  ;;  %767 = vmatprep.subr.mxu0 %v2221_v7  ;;  %v2228_v12 = vld [vmem:[#allocation14 + $0x1a8] sm:$0xff]  ;;  %564 = vmatpush1.msra.mxu1 %v496_v8  ;;  %v2258_v25 = vld [vmem:[#allocation14 + $0x1f8] sm:$0xff] }
  0x91   : > { %v2231_v15 = vld [vmem:[#allocation14 + $0x1a0] sm:$0xff]  ;;  %768 = vmatpush1.msra.mxu0 %v2224_v9  ;;  %1429 = vmatmul.mubr.msk.f32.vlgmr.msra.gmra.mxu1 %vm526_vm0, %v494_v10  ;;  %v2235_v16 = vld [vmem:[#allocation14 + $0x188] sm:$0xff]  ;;  %v2265_v27 = vld [vmem:[#allocation14 + $0x1f0] sm:$0xff]  ;;  %p1812_p2 = pnand %p1811_p0, %p2152_p3  ;;  %p1819_p8 = por %p1818_p7, %p1817_p4 }
  0x92   : > { %638 = vmatprep.subr.mxu1 %v503_v11  ;;  %769 = vmatprep.subr.mxu0 %v2228_v12  ;;  %v2238_v17 = vld [vmem:[#allocation14 + $0x180] sm:$0xff]  ;;  %v2241_v18 = vld [vmem:[%s2195_s26 + $0x8] sm:$0xff]  ;;  %v2277_v31 = vld [vmem:[#allocation14 + $0x1d0] sm:$0xff] }
  0x93   : > { %639 = vmatpush1.msra.mxu1 %v502_v14  ;;  %770 = vmatpush1.msra.mxu0 %v2231_v15  ;;  %v2244_v20 = vld [vmem:[#allocation14 + $0x168] sm:$0xff]  ;;  %v2248_v22 = vld [vmem:[#allocation14 + $0x160] sm:$0xff]  ;;  %v2271_v29 = vld [vmem:[#allocation14 + $0x1d8] sm:$0xff]  ;;  %p1813_p6 = pneg %p1812_p2 }
  0x94   : > { %771 = vmatprep.subr.mxu0 %v2235_v16  ;;  %603 = vmatprep.mubr.f32.mxu1 %v1966_v13  ;;  %v2253_v23 = vld [vmem:[#allocation14 + $0x148] sm:$0xff]  ;;  %v2256_v24 = vld [vmem:[#allocation14 + $0x140] sm:$0xff]  ;;  %v2283_v33 = vld [vmem:[#allocation14 + $0x1b8] sm:$0xff] }
  0x95   : > { %772 = vmatpush1.msra.mxu0 %v2238_v17  ;;  %1430 = vmatmul.mubr.msk.f32.gmra.mxu1 %vm526_vm0, %v2241_v18  ;;  %v2261_v26 = vld [vmem:[#allocation14 + $0x128] sm:$0xff]  ;;  %v2267_v28 = vld [vmem:[#allocation14 + $0x120] sm:$0xff]  ;;  %v2289_v35 = vld [vmem:[#allocation14 + $0x1b0] sm:$0xff]  ;;  %p1820_p10 = pnand %p1819_p8, %p1813_p6 }
  0x96   : > { %640 = vmatprep.subr.mxu1 %v499_v19  ;;  %773 = vmatprep.subr.mxu0 %v2244_v20  ;;  %v2273_v30 = vld [vmem:[#allocation14 + $0x108] sm:$0xff]  ;;  %v2279_v32 = vld [vmem:[#allocation14 + $0x100] sm:$0xff]  ;;  %v2295_v37 = vld [vmem:[#allocation14 + $0x198] sm:$0xff] }
  0x97   : > { %641 = vmatpush1.msra.mxu1 %v498_v21  ;;  %774 = vmatpush1.msra.mxu0 %v2248_v22  ;;  %v2285_v34 = vld [vmem:[#allocation14 + $0xe8] sm:$0xff]  ;;  %v2291_v36 = vld [vmem:[#allocation14 + $0xe0] sm:$0xff]  ;;  %v2301_v39 = vld [vmem:[#allocation14 + $0x190] sm:$0xff] }
  0x98   : > { %775 = vmatprep.subr.mxu0 %v2253_v23  ;;  %674 = vmatprep.mubr.f32.mxu1 %v1966_v13  ;;  %v2297_v38 = vld [vmem:[#allocation14 + $0xc8] sm:$0xff]  ;;  %v2303_v40 = vld [vmem:[#allocation14 + $0xc0] sm:$0xff]  ;;  %v2307_v41 = vld [vmem:[#allocation14 + $0x178] sm:$0xff] }
  0x99   : > { %776 = vmatpush1.msra.mxu0 %v2256_v24  ;;  %836 = vmatprep.subr.mxu1 %v2258_v25  ;;  %v2309_v42 = vld [vmem:[#allocation14 + $0xa8] sm:$0xff]  ;;  %v2313_v43 = vld [vmem:[#allocation14 + $0x170] sm:$0xff]  ;;  %v2315_v44 = vld [vmem:[#allocation14 + $0xa0] sm:$0xff] }
  0x9a   : > { %1431 = vmatmul.mubr.msk.f32.vlgmr.msra.gmra.mxu1 %vm526_vm0, %v494_v10  ;;  %777 = vmatprep.subr.mxu0 %v2261_v26  ;;  %v2319_v45 = vld [vmem:[#allocation14 + $0x158] sm:$0xff]  ;;  %v2321_v46 = vld [vmem:[#allocation14 + $0x88] sm:$0xff]  ;;  %v2325_v47 = vld [vmem:[#allocation14 + $0x150] sm:$0xff] }
  0x9b   : > { %837 = vmatpush1.msra.mxu1 %v2265_v27  ;;  %778 = vmatpush1.msra.mxu0 %v2267_v28  ;;  %v2327_v48 = vld [vmem:[#allocation14 + $0x80] sm:$0xff]  ;;  %v2331_v49 = vld [vmem:[#allocation14 + $0x138] sm:$0xff]  ;;  %v2333_v50 = vld [vmem:[#allocation14 + $0x68] sm:$0xff] }
  0x9c   : > { %838 = vmatprep.subr.mxu1 %v2271_v29  ;;  %779 = vmatprep.subr.mxu0 %v2273_v30  ;;  %v2337_v51 = vld [vmem:[#allocation14 + $0x130] sm:$0xff]  ;;  %v2339_v52 = vld [vmem:[#allocation14 + $0x60] sm:$0xff]  ;;  %v2343_v53 = vld [vmem:[#allocation14 + $0x118] sm:$0xff] }
  0x9d   : > { %839 = vmatpush1.msra.mxu1 %v2277_v31  ;;  %780 = vmatpush1.msra.mxu0 %v2279_v32  ;;  %v2345_v54 = vld [vmem:[#allocation14 + $0x48] sm:$0xff]  ;;  %v2349_v55 = vld [vmem:[#allocation14 + $0x110] sm:$0xff]  ;;  %v2351_v56 = vld [vmem:[#allocation14 + $0x40] sm:$0xff] }
  0x9e   : > { %840 = vmatprep.subr.mxu1 %v2283_v33  ;;  %781 = vmatprep.subr.mxu0 %v2285_v34  ;;  %v2355_v57 = vld [vmem:[#allocation14 + $0xf8] sm:$0xff]  ;;  %v2357_v58 = vld [vmem:[#allocation14 + $0x28] sm:$0xff]  ;;  %v2361_v59 = vld [vmem:[#allocation14 + $0xf0] sm:$0xff] }
  0x9f   : > { %841 = vmatpush1.msra.mxu1 %v2289_v35  ;;  %782 = vmatpush1.msra.mxu0 %v2291_v36  ;;  %v2363_v60 = vld [vmem:[#allocation14 + $0x20] sm:$0xff]  ;;  %v2367_v61 = vld [vmem:[#allocation14 + $0xd8] sm:$0xff]  ;;  %v2369_v62 = vld [vmem:[#allocation14 + $0x8] sm:$0xff] }
  0xa0   : > { %842 = vmatprep.subr.mxu1 %v2295_v37  ;;  %783 = vmatprep.subr.mxu0 %v2297_v38  ;;  %v2373_v63 = vld [vmem:[#allocation14 + $0xd0] sm:$0xff]  ;;  %v2375_v0 = vld [vmem:[#allocation14] sm:$0xff]  ;;  %v2379_v1 = vld [vmem:[#allocation14 + $0xb8] sm:$0xff] }
  0xa1   : > { %843 = vmatpush1.msra.mxu1 %v2301_v39  ;;  %784 = vmatpush1.msra.mxu0 %v2303_v40  ;;  %2637 = vst [vmem:[#allocation30_spill] sm:$0xff] %v2375_v0  ;;  %v759_v2 = vld [vmem:[#allocation4] sm:$0xff]  ;;  %v2383_v4 = vld [vmem:[#allocation14 + $0xb0] sm:$0xff]  ;;  %v2387_v6 = vld [vmem:[#allocation14 + $0x98] sm:$0xff] }
  0xa2   : > { %844 = vmatprep.subr.mxu1 %v2307_v41  ;;  %785 = vmatprep.subr.mxu0 %v2309_v42  ;;  %v2391_v8 = vld [vmem:[#allocation14 + $0x90] sm:$0xff]  ;;  %v2394_v10 = vld [vmem:[#allocation14 + $0x78] sm:$0xff] }
  0xa3   : > { %845 = vmatpush1.msra.mxu1 %v2313_v43  ;;  %786 = vmatpush1.msra.mxu0 %v2315_v44  ;;  %v2397_v11 = vld [vmem:[#allocation14 + $0x70] sm:$0xff]  ;;  %v2401_v14 = vld [vmem:[#allocation14 + $0x58] sm:$0xff] }
  0xa4   : > { %846 = vmatprep.subr.mxu1 %v2319_v45  ;;  %787 = vmatprep.subr.mxu0 %v2321_v46  ;;  %v2407_v19 = vld [vmem:[#allocation14 + $0x50] sm:$0xff]  ;;  %v2410_v21 = vld [vmem:[#allocation14 + $0x38] sm:$0xff] }
  0xa5   : > { %847 = vmatpush1.msra.mxu1 %v2325_v47  ;;  %788 = vmatpush1.msra.mxu0 %v2327_v48 }
  0xa6   : > { %848 = vmatprep.subr.mxu1 %v2331_v49  ;;  %789 = vmatprep.subr.mxu0 %v2333_v50 }
  0xa7   : > { %849 = vmatpush1.msra.mxu1 %v2337_v51  ;;  %790 = vmatpush1.msra.mxu0 %v2339_v52 }
  0xa8   : > { %850 = vmatprep.subr.mxu1 %v2343_v53  ;;  %791 = vmatprep.subr.mxu0 %v2345_v54 }
  0xa9   : > { %851 = vmatpush1.msra.mxu1 %v2349_v55  ;;  %792 = vmatpush1.msra.mxu0 %v2351_v56 }
  0xaa   : > { %852 = vmatprep.subr.mxu1 %v2355_v57  ;;  %793 = vmatprep.subr.mxu0 %v2357_v58 }
  0xab   : > { %853 = vmatpush1.msra.mxu1 %v2361_v59  ;;  %794 = vmatpush1.msra.mxu0 %v2363_v60 }
  0xac   : > { %854 = vmatprep.subr.mxu1 %v2367_v61  ;;  %795 = vmatprep.subr.mxu0 %v2369_v62 }
  0xad   : > { %855 = vmatpush1.msra.mxu1 %v2373_v63  ;;  %796 = vmatpush1.msra.mxu0 %v2375_v0  ;;  %v2414_v0 = vld [vmem:[#allocation14 + $0x30] sm:$0xff] }
  0xae   : > { %829 = vmatprep.mubr.f32.mxu0 %v1966_v13  ;;  %856 = vmatprep.subr.mxu1 %v2379_v1 }
  0xaf   : > { %830 = vmatmul.mubr.f32.vlgmr.msra.gmra.mxu0 %v759_v2  ;;  %857 = vmatpush1.msra.mxu1 %v2383_v4 }
  0xb0   : > { %858 = vmatprep.subr.mxu1 %v2387_v6  ;;  %680 = vmatprep.mubr.f32.mxu1 %v1966_v13 }
  0xb1   : > { %859 = vmatpush1.msra.mxu1 %v2391_v8  ;;  %934 = vmatprep.subr.mxu0 %v2216_v3  ;;  %v2418_v3 = vld [vmem:[#allocation14 + $0x18] sm:$0xff] }
  0xb2   : > { %860 = vmatprep.subr.mxu1 %v2394_v10  ;;  %1432 = vmatmul.mubr.msk.f32.gmra.mxu1 %vm526_vm0, %v2241_v18  ;;  %v2422_v18 = vld [vmem:[#allocation14 + $0x10] sm:$0xff] }
  0xb3   : > { %861 = vmatpush1.msra.mxu1 %v2397_v11  ;;  %900 = vmatprep.mubr.f32.mxu1 %v1966_v13 }
  0xb4   : > { %862 = vmatprep.subr.mxu1 %v2401_v14  ;;  %935 = vmatpush1.msra.mxu0 %v2219_v5  ;;  %v2638_v5 = vld [vmem:[#allocation30_spill] sm:$0xff] }
  0xb5   : > { %863 = vmatpush1.msra.mxu1 %v2407_v19  ;;  %936 = vmatprep.subr.mxu0 %v2221_v7  ;;  %v506_v7 = vlaneseq }
  0xb6   : > { %864 = vmatprep.subr.mxu1 %v2410_v21  ;;  %937 = vmatpush1.msra.mxu0 %v2224_v9 }
  0xb7   : > { %865 = vmatpush1.msra.mxu1 %v2414_v0  ;;  %938 = vmatprep.subr.mxu0 %v2228_v12  ;;  %v507_v9 = vshrl.u32 %v506_v7, 7  ;;  %v1110_v7 = vld [vmem:[#allocation15 + $0x28] sm:$0xff] }
  0xb8   : > { %866 = vmatprep.subr.mxu1 %v2418_v3  ;;  %939 = vmatpush1.msra.mxu0 %v2231_v15  ;;  %v504_v15 = vld [vmem:[%s2591_s5] sm:$0xf] }
  0xb9   : > { %867 = vmatpush1.msra.mxu1 %v2422_v18  ;;  %940 = vmatprep.subr.mxu0 %v2235_v16  ;;  %v508_v12 = vsub.s32 0, %v507_v9 }
  0xba   : > { %901 = vmatmul.mubr.f32.vlgmr.msra.gmra.mxu1 %v759_v2  ;;  %1005 = vmatprep.subr.mxu1 %v2258_v25 }
  0xbb   : > { %1006 = vmatpush1.msra.mxu1 %v2265_v27  ;;  %941 = vmatpush1.msra.mxu0 %v2238_v17  ;;  %v512_v17 = vsub.s32 1, %v507_v9 }
  0xbc   : > { %1007 = vmatprep.subr.mxu1 %v2271_v29  ;;  %942 = vmatprep.subr.mxu0 %v2244_v20 }
  0xbd   : > { %1008 = vmatpush1.msra.mxu1 %v2277_v31  ;;  %943 = vmatpush1.msra.mxu0 %v2248_v22  ;;  %v509_v22 = vrot.slane %v504_v15, %v508_v12  ;;  %v1108_v12 = vld [vmem:[#allocation15 + $0x18] sm:$0xff] }
  0xbe   : > { %1009 = vmatprep.subr.mxu1 %v2283_v33  ;;  %944 = vmatprep.subr.mxu0 %v2253_v23  ;;  %v513_v23 = vrot.slane %v504_v15, %v512_v17  ;;  %v1105_v17 = vld [vmem:[#allocation15] sm:$0xff] }
  0xbf   : > { %1010 = vmatpush1.msra.mxu1 %v2289_v35  ;;  %945 = vmatpush1.msra.mxu0 %v2256_v24 }
  0xc0   : > { %1011 = vmatprep.subr.mxu1 %v2295_v37  ;;  %946 = vmatprep.subr.mxu0 %v2261_v26 }
  0xc1   : > { %1012 = vmatpush1.msra.mxu1 %v2301_v39  ;;  %947 = vmatpush1.msra.mxu0 %v2267_v28  ;;  %v516_v28 = vsub.s32 2, %v507_v9 }
  0xc2   : > { %1013 = vmatprep.subr.mxu1 %v2307_v41  ;;  %948 = vmatprep.subr.mxu0 %v2273_v30  ;;  %v520_v30 = vsub.s32 3, %v507_v9  ;;  %v1109_v9 = vld [vmem:[#allocation15 + $0x20] sm:$0xff] }
  0xc3   : > { %1014 = vmatpush1.msra.mxu1 %v2313_v43  ;;  %949 = vmatpush1.msra.mxu0 %v2279_v32  ;;  %v517_v35 = vrot.slane %v504_v15, %v516_v28 }
  0xc4   : > { %1015 = vmatprep.subr.mxu1 %v2319_v45  ;;  %950 = vmatprep.subr.mxu0 %v2285_v34  ;;  %v521_v39 = vrot.slane %v504_v15, %v520_v30  ;;  %v1107_v15 = vld [vmem:[#allocation15 + $0x10] sm:$0xff] }
  0xc5   : > { %1016 = vmatpush1.msra.mxu1 %v2325_v47  ;;  %951 = vmatpush1.msra.mxu0 %v2291_v36 }
  0xc6   : > { %1017 = vmatprep.subr.mxu1 %v2331_v49  ;;  %952 = vmatprep.subr.mxu0 %v2297_v38 }
  0xc7   : > { %1018 = vmatpush1.msra.mxu1 %v2337_v51  ;;  %953 = vmatpush1.msra.mxu0 %v2303_v40 }
  0xc8   : > { %1019 = vmatprep.subr.mxu1 %v2343_v53  ;;  %954 = vmatprep.subr.mxu0 %v2309_v42 }
  0xc9   : > { %1020 = vmatpush1.msra.mxu1 %v2349_v55  ;;  %955 = vmatpush1.msra.mxu0 %v2315_v44 }
  0xca   : > { %1021 = vmatprep.subr.mxu1 %v2355_v57  ;;  %956 = vmatprep.subr.mxu0 %v2321_v46  ;;  %v760_v57 = vld [vmem:[#allocation5] sm:$0xff] }
  0xcb   : > { %1022 = vmatpush1.msra.mxu1 %v2361_v59  ;;  %957 = vmatpush1.msra.mxu0 %v2327_v48 }
  0xcc   : > { %1023 = vmatprep.subr.mxu1 %v2367_v61  ;;  %958 = vmatprep.subr.mxu0 %v2333_v50 }
  0xcd   : > { %1024 = vmatpush1.msra.mxu1 %v2373_v63  ;;  %959 = vmatpush1.msra.mxu0 %v2339_v52 }
  0xce   : > { %1025 = vmatprep.subr.mxu1 %v2379_v1  ;;  %960 = vmatprep.subr.mxu0 %v2345_v54 }
  0xcf   : > { %1026 = vmatpush1.msra.mxu1 %v2383_v4  ;;  %961 = vmatpush1.msra.mxu0 %v2351_v56 }
  0xd0   : > { %1027 = vmatprep.subr.mxu1 %v2387_v6  ;;  %962 = vmatprep.subr.mxu0 %v2357_v58  ;;  %v1120_v6 = vld [vmem:[#allocation15 + $0x78] sm:$0xff] }
  0xd1   : > { %1028 = vmatpush1.msra.mxu1 %v2391_v8  ;;  %963 = vmatpush1.msra.mxu0 %v2363_v60  ;;  %v1119_v8 = vld [vmem:[#allocation15 + $0x70] sm:$0xff] }
  0xd2   : > { %1029 = vmatprep.subr.mxu1 %v2394_v10  ;;  %964 = vmatprep.subr.mxu0 %v2369_v62  ;;  %v1118_v10 = vld [vmem:[#allocation15 + $0x68] sm:$0xff] }
  0xd3   : > { %1030 = vmatpush1.msra.mxu1 %v2397_v11  ;;  %965 = vmatpush1.msra.mxu0 %v2638_v5  ;;  %v1117_v11 = vld [vmem:[#allocation15 + $0x60] sm:$0xff]  ;;  %v1111_v5 = vld [vmem:[#allocation15 + $0x30] sm:$0xff] }
  0xd4   : > { %1031 = vmatprep.subr.mxu1 %v2401_v14  ;;  %998 = vmatprep.mubr.f32.mxu0 %v1966_v13  ;;  %v1116_v14 = vld [vmem:[#allocation15 + $0x58] sm:$0xff] }
  0xd5   : > { %1032 = vmatpush1.msra.mxu1 %v2407_v19  ;;  %1069 = vmatprep.mubr.f32.mxu1 %v1966_v13  ;;  %v1115_v19 = vld [vmem:[#allocation15 + $0x50] sm:$0xff] }
  0xd6   : > { %1033 = vmatprep.subr.mxu1 %v2410_v21  ;;  %1463 = vmatprep.subr.mxu0 %v1120_v6  ;;  %v1114_v21 = vld [vmem:[#allocation15 + $0x48] sm:$0xff] }
  0xd7   : > { %1034 = vmatpush1.msra.mxu1 %v2414_v0 }
  0xd8   : > { %1035 = vmatprep.subr.mxu1 %v2418_v3  ;;  %v1113_v3 = vld [vmem:[#allocation15 + $0x40] sm:$0xff] }
  0xd9   : > { %1036 = vmatpush1.msra.mxu1 %v2422_v18  ;;  %v1112_v18 = vld [vmem:[#allocation15 + $0x38] sm:$0xff] }
 0x151   : > { %v599_v16 = vpop.f32.mrf.mxu1 }
 0x152   : > { %v600_v29 = vadd.f32 %v599_v16, %v509_v22  ;;  %v1106_v16 = vld [vmem:[#allocation15 + $0x8] sm:$0xff] }
 0x153   : > { %v601_v20 = vpop.f32.mrf.mxu1 }
 0x154   : > { %v602_v32 = vadd.f32 %v601_v20, %v513_v23 }
 0x155   : > { %v605_v13 = vpop.f32.mrf.mxu1 }
 0x156   : > { %v2493_v24 = vadd.f32 %v605_v13, %v509_v22 }
 0x157   : > { %v607_v25 = vpop.f32.mrf.mxu1 }
 0x158   : > { %v2495_v26 = vadd.f32 %v607_v25, %v513_v23 }
 0x15a   : > { %v676_v27 = vpop.f32.mrf.mxu1 }
 0x15b   : > { %v677_v49 = vadd.f32 %v676_v27, %v517_v35 }
 0x15c   : > { %v678_v33 = vpop.f32.mrf.mxu1 }
 0x15d   : > { %v679_v46 = vadd.f32 %v678_v33, %v521_v39 }
 0x16f   : > { %v831_v31 = vpop.f32.mrf.mxu0 }
 0x170   : > { %v907_v34 = vadd.f32 %v831_v31, %v600_v29 }
 0x171   : > { %v833_v36 = vpop.f32.mrf.mxu0 }
 0x172   : > { %v908_v37 = vadd.f32 %v833_v36, %v602_v32  ;;  %v682_v38 = vpop.f32.mrf.mxu1  ;;  %v911_v41 = vmul.f32 0.5, %v907_v34 }
 0x173   : > { %v2497_v40 = vadd.f32 %v682_v38, %v517_v35 }
 0x174   : > { %v912_v42 = vmul.f32 0.5, %v908_v37  ;;  %v684_v43 = vpop.f32.mrf.mxu1 }
 0x175   : > { %v2499_v44 = vadd.f32 %v684_v43, %v521_v39 }
 0x176   : > { %1632 = vtanh.f32 %v912_v42 }
 0x177   : > { %1634 = vtanh.f32 %v911_v41 }
 0x17a   : > { %v902_v45 = vpop.f32.mrf.mxu1 }
 0x17b   : > { %v909_v50 = vadd.f32 %v902_v45, %v677_v49 }
 0x17c   : > { %v904_v47 = vpop.f32.mrf.mxu1 }
 0x17d   : > { %v910_v48 = vadd.f32 %v904_v47, %v679_v46  ;;  %v913_v54 = vmul.f32 0.5, %v909_v50 }
 0x17f   : > { %1636 = vtanh.f32 %v910_v48 }
 0x180   : > { %1638 = vtanh.f32 %v913_v54 }
 0x183   : > { %v1633_v51 = vpop.eup %1632 }
 0x184   : > { %v1635_v52 = vpop.eup %1634  ;;  %v918_v53 = vadd.f32 1.0, %v1633_v51 }
 0x185   : > { %v917_v55 = vadd.f32 1.0, %v1635_v52 }
 0x186   : > { %v921_v56 = vmul.f32 0.5, %v918_v53 }
 0x187   : > { %v920_v58 = vmul.f32 0.5, %v917_v55 }
 0x188   : > { %v924_v60 = vmul.f32 %v921_v56, %v760_v57 }
 0x18c   : > { %v1637_v59 = vpop.eup %1636 }
 0x18d   : > { %v925_v61 = vmul.f32 %v1637_v59, %v920_v58  ;;  %v1639_v63 = vpop.eup %1638 }
 0x18e   : > { %v919_v0 = vadd.f32 1.0, %v1639_v63 }
 0x18f   : > { %v2501_v62 = vadd.f32 %v925_v61, %v924_v60 }
 0x190   : > { %v922_v1 = vmul.f32 0.5, %v919_v0 }
 0x191   : > { %1640 = vtanh.f32 %v2501_v62 }
 0x19e   : > { %v1641_v2 = vpop.eup %1640 }
 0x19f   : > { %v928_v4 = vmul.f32 %v1641_v2, %v922_v1 }
 0x1a1   : > { %999 = vmatmul.mubr.f32.vlgmr.msra.gmra.mxu0 %v928_v4  ;;  %1070 = vmatmul.mubr.f32.vlgmr.msra.gmra.mxu1 %v928_v4 }
 0x1a2   : > { %1495 = vmatprep.mubr.f32.mxu0 %v928_v4  ;;  %1464 = vmatpush3.msra.mxu0 %v1120_v6 }
 0x1a3   : > { %1465 = vmatprep.subr.mxu0 %v1119_v8 }
 0x1a4   : > { %1466 = vmatpush3.msra.mxu0 %v1119_v8 }
 0x1a5   : > { %1467 = vmatprep.subr.mxu0 %v1118_v10 }
 0x1a6   : > { %1468 = vmatpush3.msra.mxu0 %v1118_v10 }
 0x1a7   : > { %1469 = vmatprep.subr.mxu0 %v1117_v11 }
 0x1a8   : > { %1470 = vmatpush3.msra.mxu0 %v1117_v11 }
 0x1a9   : > { %1471 = vmatprep.subr.mxu0 %v1116_v14 }
 0x1aa   : > { %1472 = vmatpush3.msra.mxu0 %v1116_v14 }
 0x1ab   : > { %1473 = vmatprep.subr.mxu0 %v1115_v19 }
 0x1ac   : > { %1474 = vmatpush3.msra.mxu0 %v1115_v19 }
 0x1ad   : > { %1475 = vmatprep.subr.mxu0 %v1114_v21 }
 0x1ae   : > { %1476 = vmatpush3.msra.mxu0 %v1114_v21 }
 0x1af   : > { %1477 = vmatprep.subr.mxu0 %v1113_v3 }
 0x1b0   : > { %1478 = vmatpush3.msra.mxu0 %v1113_v3 }
 0x1b1   : > { %1479 = vmatprep.subr.mxu0 %v1112_v18 }
 0x1b2   : > { %1480 = vmatpush3.msra.mxu0 %v1112_v18 }
 0x1b3   : > { %1481 = vmatprep.subr.mxu0 %v1111_v5 }
 0x1b4   : > { %1482 = vmatpush3.msra.mxu0 %v1111_v5 }
 0x1b5   : > { %1483 = vmatprep.subr.mxu0 %v1110_v7 }
 0x1b6   : > { %1484 = vmatpush3.msra.mxu0 %v1110_v7 }
 0x1b7   : > { %1485 = vmatprep.subr.mxu0 %v1109_v9 }
 0x1b8   : > { %1486 = vmatpush3.msra.mxu0 %v1109_v9 }
 0x1b9   : > { %1487 = vmatprep.subr.mxu0 %v1108_v12 }
 0x1ba   : > { %1488 = vmatpush3.msra.mxu0 %v1108_v12 }
 0x1bb   : > { %1489 = vmatprep.subr.mxu0 %v1107_v15 }
 0x1bc   : > { %1490 = vmatpush3.msra.mxu0 %v1107_v15 }
 0x1bd   : > { %1491 = vmatprep.subr.mxu0 %v1106_v16 }
 0x1be   : > { %1492 = vmatpush3.msra.mxu0 %v1106_v16 }
 0x1bf   : > { %1493 = vmatprep.subr.mxu0 %v1105_v17 }
 0x1c0   : > { %1494 = vmatpush3.msra.mxu0 %v1105_v17 }
 0x261   : > { %v1000_v20 = vpop.f32.mrf.mxu0  ;;  %v1071_v22 = vpop.f32.mrf.mxu1 }
 0x262   : > { %v1076_v13 = vadd.f32 %v1000_v20, %v2493_v24  ;;  %v1078_v31 = vadd.f32 %v1071_v22, %v2497_v40 }
 0x263   : > { %v1002_v23 = vpop.f32.mrf.mxu0  ;;  %v1073_v25 = vpop.f32.mrf.mxu1 }
 0x264   : > { %v1080_v27 = vmul.f32 0.5, %v1076_v13  ;;  %v1077_v28 = vadd.f32 %v1002_v23, %v2495_v26  ;;  %v1079_v30 = vadd.f32 %v1073_v25, %v2499_v44  ;;  %v1082_v32 = vmul.f32 0.5, %v1078_v31 }
 0x266   : > { %1642 = vtanh.f32 %v1080_v27  ;;  %v1081_v29 = vmul.f32 0.5, %v1077_v28 }
 0x268   : > { %1644 = vtanh.f32 %v1081_v29 }
 0x269   : > { %1646 = vtanh.f32 %v1079_v30 }
 0x26a   : > { %1648 = vtanh.f32 %v1082_v32 }
 0x273   : > { %v1643_v33 = vpop.eup %1642 }
 0x274   : > { %v1086_v34 = vadd.f32 1.0, %v1643_v33 }
 0x275   : > { %v1645_v35 = vpop.eup %1644 }
 0x276   : > { %v1089_v36 = vmul.f32 0.5, %v1086_v34  ;;  %v1087_v24 = vadd.f32 1.0, %v1645_v35  ;;  %v1647_v37 = vpop.eup %1646 }
 0x277   : > { %v1649_v42 = vpop.eup %1648 }
 0x278   : > { %v1090_v38 = vmul.f32 0.5, %v1087_v24  ;;  %v1094_v39 = vmul.f32 %v1647_v37, %v1089_v36  ;;  %v1088_v43 = vadd.f32 1.0, %v1649_v42 }
 0x27a   : > { %v1093_v26 = vmul.f32 %v1090_v38, %v2501_v62  ;;  %v1091_v40 = vmul.f32 0.5, %v1088_v43 }
 0x27c   : > { %v1095_v41 = vadd.f32 %v1094_v39, %v1093_v26 }
 0x27e   : > { %1100 = vst [vmem:[#allocation5] sm:$0xff] %v1095_v41  ;;  %1102 = vst [vmem:[#allocation20] sm:$0xff] %v1095_v41  ;;  %1650 = vtanh.f32 %v1095_v41 }
 0x28b   : > { %v1651_v44 = vpop.eup %1650 }
 0x28c   : > { %v1097_v45 = vmul.f32 %v1651_v44, %v1091_v40 }
 0x28e   : > { %1099 = vst [vmem:[#allocation4] sm:$0xff] %v1097_v45  ;;  %1496 = vmatmul.mubr.f32.vlgmr.msra.gmra.mxu0 %v1097_v45  ;;  %1101 = vst [vmem:[#allocation18] sm:$0xff] %v1097_v45 }
 0x28f   : > { %1823 = shalt.err (!%p1820_p10)
}
 0x290   : > { %1522 = dma.vmem_to_hbm [thread:$0]  (%p2152_p3), %s1237_s19, 128, %s2595_s9, [#allocation19]  }
 0x291   : > { %s1968_s25 = smov [#allocation20]  }
 0x292   : > { %s1249_s11 = sshll.u32 %s1968_s25, 4  ;;  %s1250_s11 = int_to_ptr.vmem [resolvable:$true] %s1249_s11 }
 0x293   : > { %s1834_s1 = scalar_lea.vmem %s1250_s11, 128  ;;  %p1841_p13 = scmp.lt.s32.totalorder %s1250_s11, %s1250_s11 }
 0x294   : > { %p1835_p11 = scmp.ne.s32.totalorder %s1250_s11, %s1834_s1  ;;  %p1842_p5 = scmp.lt.s32.totalorder %s1834_s1, %s1834_s1 }
 0x296   : > { %p1836_p1 = pnand %p1835_p11, %p2152_p3  ;;  %p1843_p0 = por %p1842_p5, %p1841_p13 }
 0x298   : > { %p1837_p9 = pneg %p1836_p1 }
 0x29a   : > { %p1844_p2 = pnand %p1843_p0, %p1837_p9 }
 0x29c   : > { %1847 = shalt.err (!%p1844_p2)
}
 0x29d   : > { %1524 = dma.vmem_to_hbm [thread:$0]  (%p2152_p3), %s1250_s11, 128, %s2596_s10, [#allocation19]   ;;  %v1433_v46 = vld [vmem:[%s2593_s7] ss:$0 sm:$0xff] }
 0x29e   : > { %s1444_s26 = sshll.u32 %s1946_s16, 8  ;;  %s1220_s6 = sshll.u32 %s2213_s4, 4  ;;  %s2534_s6 = int_to_ptr.vmem [resolvable:$true] %s1220_s6 }
 0x29f   : > { %s2531_s19 = scalar_lea.hbm %s2594_s8, %s1444_s26  ;;  %s1206_s30 = scalar_lea.sflag [#allocation8], %s2191_s29 }
 0x2a0   : > { %s1858_s12 = scalar_lea.vmem %s2534_s6, 256  ;;  %s1969_s16 = smov [#allocation17]  }
 0x2a1   : > { %p1859_p6 = scmp.ne.s32.totalorder %s2534_s6, %s1858_s12  ;;  %s1862_s28 = sshll.u32 %s1969_s16, 4  ;;  %s1863_s28 = int_to_ptr.vmem [resolvable:$false] %s1862_s28 }
 0x2a2   : > { %s1864_s25 = scalar_lea.vmem %s1863_s28, 512  ;;  %p1865_p8 = scmp.lt.s32.totalorder %s2534_s6, %s1863_s28 }
 0x2a3   : > { %p1860_p4 = pnand %p1859_p6, %p2158_p12  ;;  %p1866_p10 = scmp.lt.s32.totalorder %s1864_s25, %s1858_s12 }
 0x2a5   : > { %p1861_p7 = pneg %p1860_p4  ;;  %p1867_p11 = por %p1866_p10, %p1865_p8 }
 0x2a7   : > { %p1868_p1 = pnand %p1867_p11, %p1861_p7 }
 0x34e   : > { %v1497_v47 = vpop.f32.mrf.mxu0 }
 0x34f   : > { %v1200_v48 = vadd.f32 %v1497_v47, %v1433_v46 }
 0x350   : > { %v1194_v49 = vpop.f32.mrf.mxu0 }
 0x351   : > { %1204 = vst [vmem:[%s2213_s4 + $0x8] sm:$0xff] %v1200_v48  ;;  %v1195_v50 = vadd.f32 %v1433_v46, %v1194_v49 }
 0x353   : > { %1203 = vst [vmem:[%s2213_s4] sm:$0xff] %v1195_v50 }
 0x354   : > { %1871 = shalt.err (!%p1868_p1)
}
 0x355   : > { %s1872_s4 = scalar_lea.hbm %s2531_s19, 256  ;;  %s1876_s2 = scalar_lea.hbm %s2594_s8, 1024 }
 0x356   : > { %p1873_p9 = scmp.ne.s32.totalorder %s2531_s19, %s1872_s4  ;;  %p1877_p0 = scmp.lt.s32.totalorder %s2531_s19, %s2594_s8 }
 0x357   : > { %p1878_p2 = scmp.lt.s32.totalorder %s1876_s2, %s1872_s4 }
 0x358   : > { %p1874_p13 = pnand %p1873_p9, %p2158_p12 }
 0x359   : > { %p1879_p6 = por %p1878_p2, %p1877_p0 }
 0x35a   : > { %p1875_p5 = pneg %p1874_p13 }
 0x35c   : > { %p1880_p4 = pnand %p1879_p6, %p1875_p5 }
 0x35e   : > { %1883 = shalt.err (!%p1880_p4)
}
 0x35f   : > { %s1970_s23 = smov 128   ;;  %s1971_s26 = smov 8  }
 0x360   : > { %1520 = dma.vmem_to_hbm [thread:$0]  (%p2158_p12), %s2534_s6, 256, %s2531_s19, %s1206_s30, %s1970_s23, %s1970_s23, %s1971_s26  }
 0x361   : > { %1925 = dma.done.wait (%p2152_p3), [#allocation19], 256  }
 0x362   : > { %1927 = vsyncadd (%p2152_p3), [#allocation19], 4294967040 }
 0x363 PF: > { %p1569_p7 = scmp.ge.s32.totalorder %s1954_s18, 2  ;;  %s1269_s20 = sand.u32 1, %s1934_s13  }
 0x364   : > { %p2639_p8 = scmp.ne.s32.totalorder %s2631_s24, 0  ;;  %s1270_s21 = scalar_lea.sflag [#allocation8], %s1269_s20 }
 0x366   : > { %p1551_p10 = pnand %p1569_p7, %p2639_p8 }
 0x368   : > { %p1552_p11 = pneg %p1551_p10 }
 0x36a   : > { %1929 = dma.done.wait (%p1552_p11), %s1270_s21, 256  }
 0x36b   : > { %1931 = vsyncadd (%p1552_p11), %s1270_s21, 4294967040  ;;  %s31_s18 = sadd.s32 1, %s1954_s18   ;;  %s2640_s27 = sld [smem:[#allocation29_spill]] }
 0x36c   : > { %p28_p12 = scmp.ge.s32.totalorder %s31_s18, 6   ;;  %s2641_s16 = sld [smem:[#allocation27_spill]] }
 0x36d   : > { %s2642_s17 = sld [smem:[#allocation28_spill]]  ;;  %s2643_s13 = smov %s1938_s14 }
 0x36e   : > { %s2644_s14 = smov %s1942_s15  ;;  %30 = sbr.rel (!%p28_p12) target bundleno = 16 (0x10), region = 141 }
 0x371   : > { %s2645_s15 = smov %s2640_s27 }
 0x373   :  { %1275 = vsyncpa [#allocation7], 1 }
 0x374   :  { %1277 = vsyncpa [#allocation7 + $0x1], 1 }
 0x375   :  { %1278 = vsyncpa [#allocation10], 1 }
 0x376   :  { %1279 = vsyncpa [#allocation13], 1 }
 0x377   :  { %1280 = vsyncpa [#allocation16], 1 }
 0x378   :  { %1281 = vsyncpa [#allocation8], 1 }
 0x379   :  { %1283 = vsyncpa [#allocation8 + $0x1], 1 }
 0x37a   :  { %1284 = vsyncpa [#allocation19], 1 }

</bundles_post_ra>
